<compile_context>
chip_gen: v7x
topology: tpu7x:2x2x1
jax: 0.10.0
libtpu: 0.0.40
codegen_flags: <defaults>
</compile_context>

<pallas_src>
import functools

import jax
import jax.numpy as jnp
from jax.experimental import pallas as pl
from jax.experimental.pallas import tpu as pltpu


def _mynet_kernel(x_ref, w_ref, b_ref, o_ref):
    # x_ref: [TB, 512] f32, w_ref: [512, CP] bf16, b_ref: [1, CP] f32,
    # o_ref: [TB, CP] f32.  CP is the lane-padded class count (e.g. 256).
    x_bf16 = x_ref[...].astype(jnp.bfloat16)              # MXU takes bf16 operands
    logits = jnp.dot(x_bf16, w_ref[...],
                     preferred_element_type=jnp.float32) + b_ref[...]

    # Numerically stable softmax along the class axis (f32 VPU/EUP math).
    # Padded classes have bias = -1e30, so exp() -> 0 and they drop out.
    m = jnp.max(logits, axis=-1, keepdims=True)
    e = jnp.exp(logits - m)
    denom = jnp.sum(e, axis=-1, keepdims=True)
    # Exact divide (NOT approx reciprocal): rows sum to 1 to f32 precision and
    # the kernel is memory-bound, so this costs nothing on the critical path.
    o_ref[...] = e / denom


def prepare_params(weight, bias, lane=128):
    """One-time conversion of PyTorch-layout params to the kernel layout.

    weight: [C, 512] f32 (nn.Linear layout), bias: [C] f32.
    Returns (w_t [512, CP] bf16, b [1, CP] f32) with CP = C rounded up to a
    lane multiple; padded bias columns are -1e30 (kept f32!) so softmax gives
    them exactly 0 probability.
    """
    C, D = weight.shape
    CP = pl.cdiv(C, lane) * lane
    w_t = jnp.zeros((D, CP), jnp.bfloat16).at[:, :C].set(
        weight.T.astype(jnp.bfloat16))
    b = jnp.full((1, CP), -1e30, jnp.float32).at[0, :C].set(
        bias.astype(jnp.float32))
    return w_t, b


def _pick_batch_tile(B, tb):
    """8-aligned (sublane) batch tile, capped at `tb`.

    Prefer >=2 grid steps whenever the batch allows it so the "parallel"
    batch axis can be sharded across both TensorCores on v7x.
    """
    B8 = max(8, pl.cdiv(B, 8) * 8)
    TB = min(tb, B8)
    if pl.cdiv(B, TB) < 2 and B8 >= 16:
        TB = pl.cdiv(pl.cdiv(B8, 2), 8) * 8
    return TB


def mynet_forward(x, w_t, b, num_classes, tb=1024, trim_classes=True):
    """x: [B, 512] f32; w_t: [512, CP] bf16; b: [1, CP] f32 (from prepare_params).

    No batch padding: grid = cdiv(B, TB); Mosaic masks the partial last block
    (garbage rows stay row-local through the softmax and are never stored).
    VMEM @ TB=1024: x 2 MiB + out 1 MiB, double-buffered = 6 MiB, + 0.26 MiB
    resident weights — well under the default scoped limit on v5e/v6e/v7x.
    """
    B, D = x.shape
    CP = w_t.shape[1]
    TB = _pick_batch_tile(B, tb)

    out = pl.pallas_call(
        _mynet_kernel,
        out_shape=jax.ShapeDtypeStruct((B, CP), jnp.float32),
        grid=(pl.cdiv(B, TB),),
        in_specs=[
            pl.BlockSpec((TB, D), lambda i: (i, 0)),   # x tile moves with grid
            pl.BlockSpec((D, CP), lambda i: (0, 0)),   # weight VMEM-resident
            pl.BlockSpec((1, CP), lambda i: (0, 0)),   # bias VMEM-resident
        ],
        out_specs=pl.BlockSpec((TB, CP), lambda i: (i, 0)),
        compiler_params=pltpu.CompilerParams(
            dimension_semantics=("parallel",),         # shard batch across TCs
        ),
    )(x, w_t, b)

    if trim_classes:
        # Padded classes are exactly 0 probability; a consumer that tolerates
        # the lane-padded [B, CP] layout can skip this slice (saves one extra
        # HBM pass) by calling with trim_classes=False.
        out = out[:, :num_classes]
    return out


if __name__ == "__main__":
    num_classes = 200
    in_features = 512
    batch = 8

    key = jax.random.PRNGKey(0)
    kx, kw, kb, kx2 = jax.random.split(key, 4)

    # Deterministic synthetic parameters (shapes match nn.Linear(512, 200)).
    bound = 1.0 / (in_features ** 0.5)
    weight = jax.random.uniform(kw, (num_classes, in_features),
                                minval=-bound, maxval=bound, dtype=jnp.float32)
    bias = jax.random.uniform(kb, (num_classes,),
                              minval=-bound, maxval=bound, dtype=jnp.float32)

    # One-time parameter layout conversion (transpose + pad + bf16), hoisted
    # out of the forward path.
    w_t, b2 = prepare_params(weight, bias)

    fwd = functools.partial(mynet_forward, w_t=w_t, b=b2, num_classes=num_classes)

    def check(x):
        out = jax.block_until_ready(fwd(x))
        ref = jax.nn.softmax(x @ weight.T + bias, axis=1)
        assert out.shape == ref.shape
        # bf16 matmul operands -> relax vs the f32 reference; softmax absorbs
        # most of the logit error at these magnitudes.
        assert jnp.allclose(out, ref, atol=1e-3, rtol=1e-2)
        # Exact divide in-kernel -> rows sum to 1 within f32 precision.
        assert jnp.allclose(jnp.sum(out, axis=1), 1.0, atol=1e-5)

    # Small-batch run (module-sized input): single full block.
    x_small = jax.random.normal(kx, (batch, in_features), dtype=jnp.float32)
    check(x_small)

    # Larger batch exercises the tiled (>=2-step) grid path, no padding pass.
    x_big = jax.random.normal(kx2, (384, in_features), dtype=jnp.float32)
    check(x_big)

    print("KERNEL_OK")
</pallas_src>

<mosaic_0001>
module attributes {stable_mosaic.version = 11 : i64} {
  func.func @_mynet_kernel(%arg0: i32, %arg1: memref<8x512xf32, #tpu.memory_space<vmem>>, %arg2: memref<512x256xbf16, #tpu.memory_space<vmem>>, %arg3: memref<1x256xf32, #tpu.memory_space<vmem>>, %arg4: memref<8x256xf32, #tpu.memory_space<vmem>>) attributes {dimension_semantics = [#tpu.dimension_semantics<parallel>], iteration_bounds = array<i64: 1>, scalar_prefetch = 0 : i64, scratch_operands = 0 : i64, tpu.core_type = #tpu.core_type<tc>, window_params = [{transform_indices = @transform_0, window_bounds = array<i64: 8, 512>}, {pipeline_mode = #tpu.pipeline_mode<synchronous>, transform_indices = @transform_1, window_bounds = array<i64: 512, 256>}, {pipeline_mode = #tpu.pipeline_mode<synchronous>, transform_indices = @transform_2, window_bounds = array<i64: 1, 256>}, {transform_indices = @transform_3, window_bounds = array<i64: 8, 256>}]} {
    %c0 = arith.constant 0 : index
    %c0_0 = arith.constant 0 : index
    %0 = vector.load %arg1[%c0, %c0_0] : memref<8x512xf32, #tpu.memory_space<vmem>>, vector<8x512xf32>
    %1 = arith.truncf %0 : vector<8x512xf32> to vector<8x512xbf16>
    %c0_1 = arith.constant 0 : index
    %c0_2 = arith.constant 0 : index
    %2 = vector.load %arg2[%c0_1, %c0_2] : memref<512x256xbf16, #tpu.memory_space<vmem>>, vector<512x256xbf16>
    %cst = arith.constant dense<0.000000e+00> : vector<8x256xf32>
    %3 = tpu.matmul %1, %2, %cst {dimension_numbers = #tpu.dot_dimension_numbers<[1], [0], [0], [1], [0, 0, 1, 1], [], []>} : vector<8x512xbf16>, vector<512x256xbf16>, vector<8x256xf32> -> vector<8x256xf32>
    %c0_3 = arith.constant 0 : index
    %c0_4 = arith.constant 0 : index
    %4 = vector.load %arg3[%c0_3, %c0_4] : memref<1x256xf32, #tpu.memory_space<vmem>>, vector<1x256xf32>
    %5 = vector.broadcast %4 : vector<1x256xf32> to vector<8x256xf32>
    %6 = arith.addf %3, %5 : vector<8x256xf32>
    %cst_5 = arith.constant dense<0xFF800000> : vector<8xf32>
    %7 = vector.multi_reduction <maximumf>, %6, %cst_5 [1] : vector<8x256xf32> to vector<8xf32>
    %8 = vector.shape_cast %7 : vector<8xf32> to vector<8x1xf32>
    %9 = vector.broadcast %8 : vector<8x1xf32> to vector<8x256xf32>
    %10 = arith.subf %6, %9 : vector<8x256xf32>
    %11 = math.exp %10 : vector<8x256xf32>
    %cst_6 = arith.constant dense<0.000000e+00> : vector<8xf32>
    %12 = vector.multi_reduction <add>, %11, %cst_6 [1] : vector<8x256xf32> to vector<8xf32>
    %13 = vector.shape_cast %12 : vector<8xf32> to vector<8x1xf32>
    %14 = vector.broadcast %13 : vector<8x1xf32> to vector<8x256xf32>
    %15 = arith.divf %11, %14 : vector<8x256xf32>
    %c0_7 = arith.constant 0 : index
    %c0_8 = arith.constant 0 : index
    %16 = vector.load %arg4[%c0_7, %c0_8] : memref<8x256xf32, #tpu.memory_space<vmem>>, vector<8x256xf32>
    tpu.vector_store %arg4[%c0_7, %c0_8], %15 {strides = array<i32>} : memref<8x256xf32, #tpu.memory_space<vmem>>, vector<8x256xf32>,
    return
  }
  func.func @transform_0(%arg0: i32) -> (i32, i32) {
    %c0_i32 = arith.constant 0 : i32
    %c0_i32_0 = arith.constant 0 : i32
    return %arg0, %c0_i32 : i32, i32
  }
  func.func @transform_1(%arg0: i32) -> (i32, i32) {
    %c0_i32 = arith.constant 0 : i32
    %c0_i32_0 = arith.constant 0 : i32
    %c0_i32_1 = arith.constant 0 : i32
    return %c0_i32, %c0_i32_0 : i32, i32
  }
  func.func @transform_2(%arg0: i32) -> (i32, i32) {
    %c0_i32 = arith.constant 0 : i32
    %c0_i32_0 = arith.constant 0 : i32
    %c0_i32_1 = arith.constant 0 : i32
    return %c0_i32, %c0_i32_0 : i32, i32
  }
  func.func @transform_3(%arg0: i32) -> (i32, i32) {
    %c0_i32 = arith.constant 0 : i32
    %c0_i32_0 = arith.constant 0 : i32
    return %arg0, %c0_i32 : i32, i32
  }
}

</mosaic_0001>

<bundles_post_ra>
// kernel: tpu_custom_call.1
= control target key start
LH: loop header
LB: loop body
LE: loop exit
PB: predicated region body
PF: predicated region fallthrough
CT: control target
= control target key end

     0   :  { %8 = vsyncpa [#allocation3], 0  ;;  %s878_s0 = inlined_call_operand.hbm [shape: f32[8,512], index: 0, kind: input, shape index: {}]   ;;  %s879_s1 = inlined_call_operand.hbm [shape: bf16[512,256], index: 1, kind: input, shape index: {}]   ;;  %s880_s2 = inlined_call_operand.vmem [shape: f32[1,256], index: 2, kind: input, shape index: {}]   ;;  %s881_s3 = inlined_call_operand.hbm [shape: f32[8,256], index: 3, kind: output, shape index: {}]  }
   0x1   :  { %9 = vsyncpa [#allocation6], 0 }
   0x2   :  { %10 = vsyncpa [#allocation4], 0  ;;  %s807_s12 = smov [#allocation2]   ;;  %s808_s14 = smov [#allocation5]  }
   0x3   :  { %s17_s13 = sshll.u32 %s807_s12, 4  ;;  %s26_s15 = sshll.u32 %s808_s14, 4  ;;  %s18_s13 = int_to_ptr.vmem [resolvable:$true] %s17_s13  ;;  %s832_s15 = int_to_ptr.vmem [resolvable:$true] %s26_s15 }
   0x4   :  { %s735_s18 = scalar_lea.hbm %s878_s0, 512 }
   0x5   :  { %p736_p0 = scmp.ne.s32.totalorder %s878_s0, %s735_s18  ;;  %p739_p1 = scmp.lt.u32.totalorder %s735_s18, %s878_s0 }
   0x7   :  { %p741_p2 = pnand %p739_p1, %p736_p0 }
   0x9   :  { %744 = shalt.err (!%p741_p2)
}
   0xa   :  { %s745_s23 = scalar_lea.vmem %s18_s13, 512  ;;  %p750_p4 = scmp.lt.s32.totalorder %s18_s13, %s18_s13 }
   0xb   :  { %p746_p3 = scmp.ne.s32.totalorder %s18_s13, %s745_s23  ;;  %p751_p5 = scmp.lt.s32.totalorder %s745_s23, %s745_s23 }
   0xd   :  { %p752_p6 = por %p751_p5, %p750_p4 }
   0xf   :  { %p753_p7 = pnand %p752_p6, %p746_p3 }
  0x11   :  { %756 = shalt.err (!%p753_p7)
}
  0x12   :  { %20 = dma.hbm_to_vmem [thread:$0]  %s878_s0, 512, %s18_s13, [#allocation3]  }
  0x13   :  { %s757_s28 = scalar_lea.hbm %s879_s1, 8192 }
  0x14   :  { %p758_p8 = scmp.ne.s32.totalorder %s879_s1, %s757_s28  ;;  %p761_p9 = scmp.lt.u32.totalorder %s757_s28, %s879_s1 }
  0x16   :  { %p763_p10 = pnand %p761_p9, %p758_p8 }
  0x18   :  { %766 = shalt.err (!%p763_p10)
}
  0x19   :  { %s767_s6 = scalar_lea.vmem %s832_s15, 8192  ;;  %p772_p12 = scmp.lt.s32.totalorder %s832_s15, %s832_s15 }
  0x1a   :  { %p768_p11 = scmp.ne.s32.totalorder %s832_s15, %s767_s6  ;;  %p773_p13 = scmp.lt.s32.totalorder %s767_s6, %s767_s6 }
  0x1c   :  { %p774_p0 = por %p773_p13, %p772_p12 }
  0x1e   :  { %p775_p1 = pnand %p774_p0, %p768_p11 }
  0x20   :  { %778 = shalt.err (!%p775_p1)
}
  0x21   :  { %s809_s0 = smov 128   ;;  %s810_s7 = smov 8  }
  0x22   :  { %32 = dma.hbm_to_vmem [thread:$0]  %s879_s1, 8192, %s832_s15, [#allocation6], %s809_s0, %s809_s0, %s810_s7  }
  0x23   :  { %801 = dma.done.wait [#allocation3], 512  }
  0x24   :  { %802 = vsyncadd [#allocation3], 4294966784 }
  0x25   :  { %803 = dma.done.wait [#allocation6], 8192  }
  0x26   :  { %804 = vsyncadd [#allocation6], 4294959104  ;;  %v633_v0 = vld [vmem:[#allocation5 + $0x4] ss:$8 sps:$4 sm:$0xff]   ;;  %v637_v2 = vld [vmem:[#allocation5] ss:$8 sps:$4 sm:$0xff]  }
  0x27   :  { %v635_v1 = vld [vmem:[#allocation5 + $0x104] ss:$8 sps:$4 sm:$0xff]   ;;  %445 = vmatprep.subr.bf16.mxu1 %v633_v0  ;;  %v638_v3 = vld [vmem:[#allocation5 + $0x100] ss:$8 sps:$4 sm:$0xff]   ;;  %v639_v4 = vld [vmem:[#allocation5 + $0x14] ss:$8 sps:$4 sm:$0xff]  }
  0x28   :  { %486 = vmatprep.subr.bf16.mxu0 %v635_v1  ;;  %446 = vmatpush1.bf16.msra.mxu1 %v637_v2  ;;  %v641_v5 = vld [vmem:[#allocation5 + $0x114] ss:$8 sps:$4 sm:$0xff]   ;;  %v643_v6 = vld [vmem:[#allocation5 + $0x10] ss:$8 sps:$4 sm:$0xff]   ;;  %v645_v8 = vld [vmem:[#allocation5 + $0x24] ss:$8 sps:$4 sm:$0xff]  }
  0x29   :  { %487 = vmatpush1.bf16.msra.mxu0 %v638_v3  ;;  %447 = vmatprep.subr.bf16.mxu1 %v639_v4  ;;  %v644_v7 = vld [vmem:[#allocation5 + $0x110] ss:$8 sps:$4 sm:$0xff]   ;;  %v647_v9 = vld [vmem:[#allocation5 + $0x124] ss:$8 sps:$4 sm:$0xff]   ;;  %v649_v10 = vld [vmem:[#allocation5 + $0x20] ss:$8 sps:$4 sm:$0xff]  }
  0x2a   :  { %488 = vmatprep.subr.bf16.mxu0 %v641_v5  ;;  %v650_v11 = vld [vmem:[#allocation5 + $0x120] ss:$8 sps:$4 sm:$0xff]   ;;  %v651_v12 = vld [vmem:[#allocation5 + $0x34] ss:$8 sps:$4 sm:$0xff]   ;;  %v655_v14 = vld [vmem:[#allocation5 + $0x30] ss:$8 sps:$4 sm:$0xff]  }
  0x2b   :  { %v653_v13 = vld [vmem:[#allocation5 + $0x134] ss:$8 sps:$4 sm:$0xff]   ;;  %v656_v15 = vld [vmem:[#allocation5 + $0x130] ss:$8 sps:$4 sm:$0xff]   ;;  %v657_v16 = vld [vmem:[#allocation5 + $0x44] ss:$8 sps:$4 sm:$0xff]  }
  0x2c   :  { %448 = vmatpush1.bf16.msra.mxu1 %v643_v6  ;;  %v659_v17 = vld [vmem:[#allocation5 + $0x144] ss:$8 sps:$4 sm:$0xff]   ;;  %v661_v18 = vld [vmem:[#allocation5 + $0x40] ss:$8 sps:$4 sm:$0xff]   ;;  %v663_v20 = vld [vmem:[#allocation5 + $0x54] ss:$8 sps:$4 sm:$0xff]  }
  0x2d   :  { %489 = vmatpush1.bf16.msra.mxu0 %v644_v7  ;;  %449 = vmatprep.subr.bf16.mxu1 %v645_v8  ;;  %v662_v19 = vld [vmem:[#allocation5 + $0x140] ss:$8 sps:$4 sm:$0xff]   ;;  %v665_v21 = vld [vmem:[#allocation5 + $0x154] ss:$8 sps:$4 sm:$0xff]   ;;  %v667_v22 = vld [vmem:[#allocation5 + $0x50] ss:$8 sps:$4 sm:$0xff]   ;;  %v115_v8 = vlaneseq }
  0x2e   :  { %490 = vmatprep.subr.bf16.mxu0 %v647_v9  ;;  %v668_v23 = vld [vmem:[#allocation5 + $0x150] ss:$8 sps:$4 sm:$0xff]   ;;  %v669_v24 = vld [vmem:[#allocation5 + $0x64] ss:$8 sps:$4 sm:$0xff]   ;;  %v673_v26 = vld [vmem:[#allocation5 + $0x60] ss:$8 sps:$4 sm:$0xff]  }
  0x2f   :  { %v671_v25 = vld [vmem:[#allocation5 + $0x164] ss:$8 sps:$4 sm:$0xff]   ;;  %v674_v27 = vld [vmem:[#allocation5 + $0x160] ss:$8 sps:$4 sm:$0xff]   ;;  %v675_v28 = vld [vmem:[#allocation5 + $0x74] ss:$8 sps:$4 sm:$0xff]  }
  0x30   :  { %450 = vmatpush1.bf16.msra.mxu1 %v649_v10  ;;  %v677_v29 = vld [vmem:[#allocation5 + $0x174] ss:$8 sps:$4 sm:$0xff]   ;;  %v679_v30 = vld [vmem:[#allocation5 + $0x70] ss:$8 sps:$4 sm:$0xff]   ;;  %v681_v32 = vld [vmem:[#allocation5 + $0x84] ss:$8 sps:$4 sm:$0xff]  }
  0x31   :  { %491 = vmatpush1.bf16.msra.mxu0 %v650_v11  ;;  %451 = vmatprep.subr.bf16.mxu1 %v651_v12  ;;  %v680_v31 = vld [vmem:[#allocation5 + $0x170] ss:$8 sps:$4 sm:$0xff]   ;;  %v683_v33 = vld [vmem:[#allocation5 + $0x184] ss:$8 sps:$4 sm:$0xff]   ;;  %v685_v34 = vld [vmem:[#allocation5 + $0x80] ss:$8 sps:$4 sm:$0xff]  }
  0x32   :  { %492 = vmatprep.subr.bf16.mxu0 %v653_v13  ;;  %v686_v35 = vld [vmem:[#allocation5 + $0x180] ss:$8 sps:$4 sm:$0xff]   ;;  %v687_v36 = vld [vmem:[#allocation5 + $0x94] ss:$8 sps:$4 sm:$0xff]   ;;  %v691_v38 = vld [vmem:[#allocation5 + $0x90] ss:$8 sps:$4 sm:$0xff]  }
  0x33   :  { %v689_v37 = vld [vmem:[#allocation5 + $0x194] ss:$8 sps:$4 sm:$0xff]   ;;  %v692_v39 = vld [vmem:[#allocation5 + $0x190] ss:$8 sps:$4 sm:$0xff]   ;;  %v693_v40 = vld [vmem:[#allocation5 + $0xa4] ss:$8 sps:$4 sm:$0xff]  }
  0x34   :  { %452 = vmatpush1.bf16.msra.mxu1 %v655_v14  ;;  %v695_v41 = vld [vmem:[#allocation5 + $0x1a4] ss:$8 sps:$4 sm:$0xff]   ;;  %v697_v42 = vld [vmem:[#allocation5 + $0xa0] ss:$8 sps:$4 sm:$0xff]   ;;  %v699_v44 = vld [vmem:[#allocation5 + $0xb4] ss:$8 sps:$4 sm:$0xff]  }
  0x35   :  { %493 = vmatpush1.bf16.msra.mxu0 %v656_v15  ;;  %453 = vmatprep.subr.bf16.mxu1 %v657_v16  ;;  %v698_v43 = vld [vmem:[#allocation5 + $0x1a0] ss:$8 sps:$4 sm:$0xff]   ;;  %v701_v45 = vld [vmem:[#allocation5 + $0x1b4] ss:$8 sps:$4 sm:$0xff]   ;;  %v703_v49 = vld [vmem:[#allocation5 + $0xb0] ss:$8 sps:$4 sm:$0xff]  }
  0x36   :  { %494 = vmatprep.subr.bf16.mxu0 %v659_v17  ;;  %v42_v46 = vld [vmem:[#allocation2 + $0x8] sm:$0xff]  ;;  %v44_v48 = vld [vmem:[#allocation2 + $0x18] sm:$0xff]  ;;  %v41_v4 = vld [vmem:[#allocation2] sm:$0xff]  ;;  %v116_v9 = vshrl.u32 %v115_v8, 7 }
  0x37   :  { %v46_v47 = vpack.c.bf16 %v42_v46, %v42_v46  ;;  %v704_v50 = vld [vmem:[#allocation5 + $0x1b0] ss:$8 sps:$4 sm:$0xff]   ;;  %v48_v51 = vpack.c.bf16 %v44_v48, %v44_v48  ;;  %v705_v52 = vld [vmem:[#allocation5 + $0xc4] ss:$8 sps:$4 sm:$0xff]   ;;  %v709_v54 = vld [vmem:[#allocation5 + $0xc0] ss:$8 sps:$4 sm:$0xff]   ;;  %v45_v6 = vpack.c.bf16 %v41_v4, %v41_v4 }
  0x38   :  { %454 = vmatpush1.bf16.msra.mxu1 %v661_v18  ;;  %v707_v53 = vld [vmem:[#allocation5 + $0x1c4] ss:$8 sps:$4 sm:$0xff]   ;;  %v710_v55 = vld [vmem:[#allocation5 + $0x1c0] ss:$8 sps:$4 sm:$0xff]   ;;  %v711_v56 = vld [vmem:[#allocation5 + $0xd4] ss:$8 sps:$4 sm:$0xff]  }
  0x39   :  { %495 = vmatpush1.bf16.msra.mxu0 %v662_v19  ;;  %455 = vmatprep.subr.bf16.mxu1 %v663_v20  ;;  %v713_v57 = vld [vmem:[#allocation5 + $0x1d4] ss:$8 sps:$4 sm:$0xff]   ;;  %v715_v58 = vld [vmem:[#allocation5 + $0xd0] ss:$8 sps:$4 sm:$0xff]   ;;  %v717_v60 = vld [vmem:[#allocation5 + $0xe4] ss:$8 sps:$4 sm:$0xff]  }
  0x3a   :  { %496 = vmatprep.subr.bf16.mxu0 %v665_v21  ;;  %477 = vmatprep.mubr.bf16.mxu1 %v46_v47  ;;  %v716_v59 = vld [vmem:[#allocation5 + $0x1d0] ss:$8 sps:$4 sm:$0xff]   ;;  %v719_v61 = vld [vmem:[#allocation5 + $0x1e4] ss:$8 sps:$4 sm:$0xff]   ;;  %v721_v62 = vld [vmem:[#allocation5 + $0xe0] ss:$8 sps:$4 sm:$0xff]  }
  0x3b   :  { %518 = vmatprep.mubr.bf16.mxu0 %v48_v51  ;;  %v722_v63 = vld [vmem:[#allocation5 + $0x1e0] ss:$8 sps:$4 sm:$0xff]   ;;  %v723_v0 = vld [vmem:[#allocation5 + $0xf4] ss:$8 sps:$4 sm:$0xff]   ;;  %v727_v2 = vld [vmem:[#allocation5 + $0xf0] ss:$8 sps:$4 sm:$0xff]  }
  0x3c   :  { %456 = vmatpush1.bf16.msra.mxu1 %v667_v22  ;;  %v725_v1 = vld [vmem:[#allocation5 + $0x1f4] ss:$8 sps:$4 sm:$0xff]   ;;  %v728_v3 = vld [vmem:[#allocation5 + $0x1f0] ss:$8 sps:$4 sm:$0xff]   ;;  %v117_v10 = vsub.s32 0, %v116_v9  ;;  %v121_v12 = vsub.s32 1, %v116_v9 }
  0x3d   :  { %497 = vmatpush1.bf16.msra.mxu0 %v668_v23  ;;  %457 = vmatprep.subr.bf16.mxu1 %v669_v24  ;;  %v43_v5 = vld [vmem:[#allocation2 + $0x10] sm:$0xff]  ;;  %v113_v11 = vld [vmem:[%s880_s2] sm:$0x3]  ;;  %s811_s2 = smov [#allocation7]  }
  0x3e   :  { %498 = vmatprep.subr.bf16.mxu0 %v671_v25  ;;  %v47_v7 = vpack.c.bf16 %v43_v5, %v43_v5  ;;  %v118_v13 = vrot.slane %v113_v11, %v117_v10  ;;  %v122_v14 = vrot.slane %v113_v11, %v121_v12  ;;  %s550_s11 = sshll.u32 %s811_s2, 4  ;;  %s551_s11 = int_to_ptr.vmem [resolvable:$true] %s550_s11 }
  0x3f   :  { %s779_s12 = scalar_lea.vmem %s551_s11, 256  ;;  %p784_p3 = scmp.lt.s32.totalorder %s551_s11, %s551_s11 }
  0x40   :  { %458 = vmatpush1.bf16.msra.mxu1 %v673_v26  ;;  %p780_p2 = scmp.ne.s32.totalorder %s551_s11, %s779_s12  ;;  %p785_p4 = scmp.lt.s32.totalorder %s779_s12, %s779_s12 }
  0x41   :  { %499 = vmatpush1.bf16.msra.mxu0 %v674_v27  ;;  %459 = vmatprep.subr.bf16.mxu1 %v675_v28 }
  0x42   :  { %500 = vmatprep.subr.bf16.mxu0 %v677_v29  ;;  %p786_p5 = por %p785_p4, %p784_p3 }
  0x44   :  { %460 = vmatpush1.bf16.msra.mxu1 %v679_v30  ;;  %p787_p6 = pnand %p786_p5, %p780_p2 }
  0x45   :  { %501 = vmatpush1.bf16.msra.mxu0 %v680_v31  ;;  %461 = vmatprep.subr.bf16.mxu1 %v681_v32 }
  0x46   :  { %502 = vmatprep.subr.bf16.mxu0 %v683_v33 }
  0x48   :  { %462 = vmatpush1.bf16.msra.mxu1 %v685_v34 }
  0x49   :  { %503 = vmatpush1.bf16.msra.mxu0 %v686_v35  ;;  %463 = vmatprep.subr.bf16.mxu1 %v687_v36 }
  0x4a   :  { %504 = vmatprep.subr.bf16.mxu0 %v689_v37 }
  0x4c   :  { %464 = vmatpush1.bf16.msra.mxu1 %v691_v38 }
  0x4d   :  { %505 = vmatpush1.bf16.msra.mxu0 %v692_v39  ;;  %465 = vmatprep.subr.bf16.mxu1 %v693_v40 }
  0x4e   :  { %506 = vmatprep.subr.bf16.mxu0 %v695_v41 }
  0x50   :  { %466 = vmatpush1.bf16.msra.mxu1 %v697_v42 }
  0x51   :  { %507 = vmatpush1.bf16.msra.mxu0 %v698_v43  ;;  %467 = vmatprep.subr.bf16.mxu1 %v699_v44 }
  0x52   :  { %508 = vmatprep.subr.bf16.mxu0 %v701_v45 }
  0x54   :  { %468 = vmatpush1.bf16.msra.mxu1 %v703_v49 }
  0x55   :  { %509 = vmatpush1.bf16.msra.mxu0 %v704_v50  ;;  %469 = vmatprep.subr.bf16.mxu1 %v705_v52 }
  0x56   :  { %510 = vmatprep.subr.bf16.mxu0 %v707_v53 }
  0x58   :  { %470 = vmatpush1.bf16.msra.mxu1 %v709_v54 }
  0x59   :  { %511 = vmatpush1.bf16.msra.mxu0 %v710_v55  ;;  %471 = vmatprep.subr.bf16.mxu1 %v711_v56 }
  0x5a   :  { %512 = vmatprep.subr.bf16.mxu0 %v713_v57 }
  0x5c   :  { %472 = vmatpush1.bf16.msra.mxu1 %v715_v58 }
  0x5d   :  { %513 = vmatpush1.bf16.msra.mxu0 %v716_v59  ;;  %473 = vmatprep.subr.bf16.mxu1 %v717_v60 }
  0x5e   :  { %514 = vmatprep.subr.bf16.mxu0 %v719_v61 }
  0x60   :  { %474 = vmatpush1.bf16.msra.mxu1 %v721_v62 }
  0x61   :  { %515 = vmatpush1.bf16.msra.mxu0 %v722_v63  ;;  %475 = vmatprep.subr.bf16.mxu1 %v723_v0 }
  0x62   :  { %516 = vmatprep.subr.bf16.mxu0 %v725_v1 }
  0x64   :  { %476 = vmatpush1.bf16.msra.mxu1 %v727_v2 }
  0x65   :  { %517 = vmatpush1.bf16.msra.mxu0 %v728_v3 }
  0x67   :  { %478 = vmatmul.mubr.bf16.vlgmr.msra.gmra.mrb[0].mxu1 %v45_v6 }
  0x68   :  { %519 = vmatmul.mubr.bf16.vlgmr.msra.gmra.mrb[0].mxu0 %v47_v7 }
 0x13a   :  { %v479_v15 = vpop.f32.mrb[0].mxu1 }
 0x13b   :  { %v520_v16 = vpop.f32.mrb[0].mxu0  ;;  %v480_v17 = vadd.f32 %v479_v15, %v118_v13  ;;  %v481_v18 = vpop.f32.mrb[1].mxu1 }
 0x13c   :  { %v522_v19 = vpop.f32.mrb[1].mxu0  ;;  %v482_v20 = vadd.f32 %v481_v18, %v122_v14  ;;  %v483_v21 = vpop.f32.mrb[2].mxu1 }
 0x13d   :  { %v524_v22 = vpop.f32.mrb[2].mxu0  ;;  %v521_v23 = vadd.f32 %v520_v16, %v480_v17  ;;  %v484_v24 = vpop.f32.mrb[3].mxu1 }
 0x13e   :  { %v525_v25 = vpop.f32.mrb[3].mxu0  ;;  %v523_v26 = vadd.f32 %v522_v19, %v482_v20 }
 0x140   :  { %v527_v27 = vmax.f32 %v521_v23, %v523_v26 }
 0x142   :  { %528 = vmax.xlane.f32.xlu0 %v527_v27 }
 0x1cf   :  { %v529_v28 = vpop.xlane.xlu0 %528 }
 0x1d0   :  { %v530_v29 = vsub.f32 %v521_v23, %v529_v28  ;;  %v531_v30 = vsub.f32 %v523_v26, %v529_v28 }
 0x1d2   :  { %v532_v31 = vmul.f32 1.442695, %v530_v29  ;;  %v534_v32 = vmul.f32 1.442695, %v531_v30 }
 0x1d4   :  { %729 = vpow2.f32 %v532_v31 }
 0x1d5   :  { %731 = vpow2.f32 %v534_v32 }
 0x1de   :  { %v730_v33 = vpop.eup %729 }
 0x1df   :  { %v732_v34 = vpop.eup %731 }
 0x1e0   :  { %v536_v35 = vadd.f32 %v732_v34, %v730_v33 }
 0x1e2   :  { %537 = vadd.xlane.f32.xlu0 %v536_v35 }
 0x26f   :  { %v538_v36 = vpop.xlane.xlu0 %537 }
 0x270   :  { %733 = vrcp.f32 %v538_v36 }
 0x27a   :  { %v734_v37 = vpop.eup %733 }
 0x27b   :  { %v540_v38 = vmul.f32 %v734_v37, %v730_v33  ;;  %v541_v39 = vmul.f32 %v734_v37, %v732_v34 }
 0x27d   :  { %542 = vst [vmem:[#allocation7] sm:$0xff] %v540_v38  ;;  %543 = vst [vmem:[#allocation7 + $0x8] sm:$0xff] %v541_v39 }
 0x27e   :  { %790 = shalt.err (!%p787_p6)
}
 0x27f   :  { %s791_s15 = scalar_lea.hbm %s881_s3, 256 }
 0x280   :  { %p792_p7 = scmp.ne.s32.totalorder %s881_s3, %s791_s15  ;;  %p795_p8 = scmp.lt.u32.totalorder %s791_s15, %s881_s3 }
 0x282   :  { %p797_p9 = pnand %p795_p8, %p792_p7 }
 0x284   :  { %800 = shalt.err (!%p797_p9)
}
 0x285   :  { %553 = dma.vmem_to_hbm [thread:$0]  %s551_s11, 256, %s881_s3, [#allocation4]  }
 0x286   :  { %805 = dma.done.wait [#allocation4], 256  }
 0x287   :  { %806 = vsyncadd [#allocation4], 4294967040 }
 0x288   :  { %557 = vsyncpa [#allocation3], 1 }
 0x289   :  { %558 = vsyncpa [#allocation6], 1 }
 0x28a   :  { %559 = vsyncpa [#allocation4], 1 }

</bundles_post_ra>
